<compile_context>
chip_gen: v6e
topology: v6e:2x2x1
jax: 0.10.0
libtpu: 0.0.40
codegen_flags: <defaults>
</compile_context>

<pallas_src>
import math
import jax
import jax.numpy as jnp
from jax.experimental import pallas as pl
from jax.experimental.pallas import tpu as pltpu

_EPS = 1e-12  # matches torch.nn.functional.normalize default eps


def _round_up(x, m):
    return (x + m - 1) // m * m


def _lmcl_logits_kernel(feat_ref, w_ref, out_ref):
    """One (tm, tn) tile of cosine logits.

    feat_ref: (tm, D), w_ref: (tn, D), out_ref: (tm, tn).
    """
    f32 = jnp.float32
    feat = feat_ref[...]          # (tm, D), input dtype
    w = w_ref[...]                # (tn, D), input dtype

    # Row norms computed in f32 regardless of operand dtype.  rsqrt lowers to
    # the EUP slot, so it overlaps with VPU/MXU work; clamping norm^2 at eps^2
    # reproduces torch's x / max(||x||, eps) (incl. zero padding rows -> 0).
    feat32 = feat.astype(f32)
    w32 = w.astype(f32)
    inv_f = jax.lax.rsqrt(
        jnp.maximum(jnp.sum(feat32 * feat32, axis=-1, keepdims=True),
                    _EPS * _EPS))                       # (tm, 1)
    inv_w = jax.lax.rsqrt(
        jnp.maximum(jnp.sum(w32 * w32, axis=-1, keepdims=True),
                    _EPS * _EPS))                       # (tn, 1)

    # Normalize, then cast back to the operand dtype so bf16 inputs take the
    # fast bf16 MXU path; accumulate in f32 on the MXU.
    f_n = (feat32 * inv_f).astype(feat.dtype)
    w_n = (w32 * inv_w).astype(w.dtype)
    logits = jax.lax.dot_general(
        f_n, w_n,
        dimension_numbers=(((1,), (1,)), ((), ())),
        preferred_element_type=f32)                     # (tm, tn)

    out_ref[...] = logits.astype(out_ref.dtype)


def lmcl_logits(feat, weights, *, tm=256, tn=1024, out_dtype=jnp.float32):
    """Pallas implementation of LMCL.forward()'s returned cosine logits."""
    B, D = feat.shape
    C, D2 = weights.shape
    assert D == D2, "embedding size wrong"

    # Clamp tile sizes to the (padded) problem; keep tm % 8 == 0, tn % 128 == 0
    # so output tiles are lane-dense and input second-minor dims are aligned.
    tm = _round_up(max(8, min(tm, _round_up(B, 8))), 8)
    tn = _round_up(max(128, min(tn, _round_up(C, 128))), 128)

    Bp = _round_up(B, tm)
    Cp = _round_up(C, tn)
    if Bp != B:
        feat = jnp.pad(feat, ((0, Bp - B), (0, 0)))
    if Cp != C:
        weights = jnp.pad(weights, ((0, Cp - C), (0, 0)))

    grid = (Bp // tm, Cp // tn)

    # Double-buffered input/output tiles (+ headroom for compiler scratch),
    # capped so it stays safe on v7x's smaller (64 MiB) physical VMEM.
    tile_bytes = 2 * 4 * (tm * D + tn * D + tm * tn)
    vmem_limit = int(min(max(tile_bytes + (8 << 20), 16 << 20), 48 << 20))

    out = pl.pallas_call(
        _lmcl_logits_kernel,
        out_shape=jax.ShapeDtypeStruct((Bp, Cp), out_dtype),
        grid_spec=pl.GridSpec(
            grid=grid,
            in_specs=[
                pl.BlockSpec((tm, D), lambda i, j: (i, 0)),
                pl.BlockSpec((tn, D), lambda i, j: (j, 0)),
            ],
            out_specs=pl.BlockSpec((tm, tn), lambda i, j: (i, j)),
        ),
        compiler_params=pltpu.CompilerParams(
            dimension_semantics=("parallel", "parallel"),
            vmem_limit_bytes=vmem_limit,
        ),
    )(feat, weights)

    if Bp != B or Cp != C:
        out = out[:B, :C]
    return out


def lmcl_margin_ce_loss(logits, labels, s=5.0, m=0.2):
    """Plain-JAX glue reproducing the margin + cross-entropy part of the loss.

    m_logits = s * (logits - m * one_hot(labels)); CE(m_logits, labels).
    """
    C = logits.shape[1]
    margin = jax.nn.one_hot(labels, C, dtype=logits.dtype) * m
    m_logits = s * (logits - margin)
    log_probs = jax.nn.log_softmax(m_logits, axis=-1)
    nll = -jnp.take_along_axis(log_probs, labels[:, None], axis=1)[:, 0]
    return jnp.mean(nll)
    # TODO(synk): SCLoss is referenced by the PyTorch module but not defined in
    # the provided source, so the lam2-weighted SCL term cannot be reproduced.


if __name__ == "__main__":
    # Shapes consistent with the module's __init__: feat_dim=32, num_classes=16.
    B, feat_dim, num_classes = 8, 32, 16
    s_scale, m_margin = 5.0, 0.2

    key = jax.random.PRNGKey(0)
    k_feat, k_w, k_lbl, k_f2, k_w2 = jax.random.split(key, 5)

    feat = jax.random.normal(k_feat, (B, feat_dim), dtype=jnp.float32)

    # kaiming_normal_ on (num_classes, feat_dim): fan_in=feat_dim, gain=sqrt(2)
    std = math.sqrt(2.0 / feat_dim)
    weights = jax.random.normal(k_w, (num_classes, feat_dim),
                                dtype=jnp.float32) * std
    labels = jax.random.randint(k_lbl, (B,), 0, num_classes, dtype=jnp.int32)

    def _ref(f, w):
        fn = f / jnp.maximum(jnp.linalg.norm(f, axis=1, keepdims=True), _EPS)
        wn = w / jnp.maximum(jnp.linalg.norm(w, axis=1, keepdims=True), _EPS)
        return fn @ wn.T

    # Case 1: module-sized toy problem (single tile after padding C -> 128).
    logits = jax.block_until_ready(lmcl_logits(feat, weights))
    assert logits.shape == (B, num_classes)
    # Tolerance covers a few ulps difference between EUP rsqrt and div/sqrt.
    assert jnp.allclose(logits, _ref(feat, weights), atol=1e-4, rtol=1e-4), \
        "mismatch vs ref (case 1)"

    # Case 2: multi-tile grid with padding on both axes (B=48, C=300, D=128).
    B2, D2, C2 = 48, 128, 300
    feat2 = jax.random.normal(k_f2, (B2, D2), dtype=jnp.float32)
    w2 = jax.random.normal(k_w2, (C2, D2), dtype=jnp.float32) * math.sqrt(2.0 / D2)
    logits2 = jax.block_until_ready(lmcl_logits(feat2, w2, tm=16, tn=128))
    assert logits2.shape == (B2, C2)
    assert jnp.allclose(logits2, _ref(feat2, w2), atol=1e-4, rtol=1e-4), \
        "mismatch vs ref (case 2)"

    # Exercise the (partial) loss path as well.
    loss = jax.block_until_ready(
        lmcl_margin_ce_loss(logits, labels, s=s_scale, m=m_margin))
    assert jnp.isfinite(loss)

    print("KERNEL_OK")
</pallas_src>

<mosaic_0001>
module attributes {stable_mosaic.version = 11 : i64} {
  func.func @_lmcl_logits_kernel(%arg0: i32, %arg1: i32, %arg2: memref<8x32xf32, #tpu.memory_space<vmem>>, %arg3: memref<128x32xf32, #tpu.memory_space<vmem>>, %arg4: memref<8x128xf32, #tpu.memory_space<vmem>>) attributes {dimension_semantics = [#tpu.dimension_semantics<parallel>, #tpu.dimension_semantics<parallel>], iteration_bounds = array<i64: 1, 1>, scalar_prefetch = 0 : i64, scratch_operands = 0 : i64, tpu.core_type = #tpu.core_type<tc>, window_params = [{transform_indices = @transform_0, window_bounds = array<i64: 8, 32>}, {transform_indices = @transform_1, window_bounds = array<i64: 128, 32>}, {transform_indices = @transform_2, window_bounds = array<i64: 8, 128>}]} {
    %c0 = arith.constant 0 : index
    %c0_0 = arith.constant 0 : index
    %0 = vector.load %arg2[%c0, %c0_0] : memref<8x32xf32, #tpu.memory_space<vmem>>, vector<8x32xf32>
    %c0_1 = arith.constant 0 : index
    %c0_2 = arith.constant 0 : index
    %1 = vector.load %arg3[%c0_1, %c0_2] : memref<128x32xf32, #tpu.memory_space<vmem>>, vector<128x32xf32>
    %2 = arith.mulf %0, %0 : vector<8x32xf32>
    %cst = arith.constant dense<0.000000e+00> : vector<8xf32>
    %3 = vector.multi_reduction <add>, %2, %cst [1] : vector<8x32xf32> to vector<8xf32>
    %4 = vector.shape_cast %3 : vector<8xf32> to vector<8x1xf32>
    %cst_3 = arith.constant 1.000000e-24 : f32
    %5 = vector.broadcast %cst_3 : f32 to vector<8x1xf32>
    %6 = arith.maximumf %4, %5 : vector<8x1xf32>
    %7 = math.rsqrt %6 : vector<8x1xf32>
    %8 = arith.mulf %1, %1 : vector<128x32xf32>
    %cst_4 = arith.constant dense<0.000000e+00> : vector<128xf32>
    %9 = vector.multi_reduction <add>, %8, %cst_4 [1] : vector<128x32xf32> to vector<128xf32>
    %10 = vector.shape_cast %9 : vector<128xf32> to vector<128x1xf32>
    %cst_5 = arith.constant 1.000000e-24 : f32
    %11 = vector.broadcast %cst_5 : f32 to vector<128x1xf32>
    %12 = arith.maximumf %10, %11 : vector<128x1xf32>
    %13 = math.rsqrt %12 : vector<128x1xf32>
    %14 = vector.broadcast %7 : vector<8x1xf32> to vector<8x32xf32>
    %15 = arith.mulf %0, %14 : vector<8x32xf32>
    %16 = vector.broadcast %13 : vector<128x1xf32> to vector<128x32xf32>
    %17 = arith.mulf %1, %16 : vector<128x32xf32>
    %cst_6 = arith.constant dense<0.000000e+00> : vector<8x128xf32>
    %18 = tpu.matmul %15, %17, %cst_6 {dimension_numbers = #tpu.dot_dimension_numbers<[1], [1], [0], [0], [0, 0, 1, 0], [], []>} : vector<8x32xf32>, vector<128x32xf32>, vector<8x128xf32> -> vector<8x128xf32>
    %c0_7 = arith.constant 0 : index
    %c0_8 = arith.constant 0 : index
    %19 = vector.load %arg4[%c0_7, %c0_8] : memref<8x128xf32, #tpu.memory_space<vmem>>, vector<8x128xf32>
    tpu.vector_store %arg4[%c0_7, %c0_8], %18 {strides = array<i32>} : memref<8x128xf32, #tpu.memory_space<vmem>>, vector<8x128xf32>,
    return
  }
  func.func @transform_0(%arg0: i32, %arg1: i32) -> (i32, i32) {
    %c0_i32 = arith.constant 0 : i32
    %c0_i32_0 = arith.constant 0 : i32
    return %arg0, %c0_i32 : i32, i32
  }
  func.func @transform_1(%arg0: i32, %arg1: i32) -> (i32, i32) {
    %c0_i32 = arith.constant 0 : i32
    %c0_i32_0 = arith.constant 0 : i32
    return %arg1, %c0_i32 : i32, i32
  }
  func.func @transform_2(%arg0: i32, %arg1: i32) -> (i32, i32) {
    %c0_i32 = arith.constant 0 : i32
    return %arg0, %arg1 : i32, i32
  }
}

</mosaic_0001>

<bundles_post_ra>
// kernel: tpu_custom_call.1
= control target key start
LH: loop header
LB: loop body
LE: loop exit
PB: predicated region body
PF: predicated region fallthrough
CT: control target
= control target key end

     0   :  { %vm30_vm0 = vcmask 261120   ;;  %s621_s0 = inlined_call_operand.vmem [shape: f32[8,32], index: 0, kind: input, shape index: {}]   ;;  %s622_s1 = inlined_call_operand.vmem [shape: f32[128,32], index: 1, kind: input, shape index: {}]   ;;  %s623_s2 = inlined_call_operand.hbm [shape: f32[8,128], index: 2, kind: output, shape index: {}]  }
   0x1   :  { %v434_v0 = vld [vmem:[%s622_s1 + $0x78] sm:$0xff]  ;;  %v439_v1 = vld [vmem:[%s622_s1 + $0x70] sm:$0xff]  ;;  %v444_v2 = vld [vmem:[%s622_s1 + $0x68] sm:$0xff] }
   0x2   :  { %v51_v3 = vmul.f32 %v434_v0, %v434_v0  ;;  %v50_v4 = vmul.f32 %v439_v1, %v439_v1  ;;  %v49_v5 = vmul.f32 %v444_v2, %v444_v2  ;;  %v455_v6 = vld [vmem:[%s622_s1 + $0x60] sm:$0xff]  ;;  %v462_v8 = vld [vmem:[%s622_s1 + $0x58] sm:$0xff]  ;;  %v467_v9 = vld [vmem:[%s622_s1 + $0x50] sm:$0xff] }
   0x3   :  { %v48_v7 = vmul.f32 %v455_v6, %v455_v6  ;;  %v47_v14 = vmul.f32 %v462_v8, %v462_v8  ;;  %v46_v15 = vmul.f32 %v467_v9, %v467_v9 }
   0x4   :  { %v97_v10 = vsel %vm30_vm0, %v51_v3, 0.0  ;;  %v91_v11 = vsel %vm30_vm0, %v49_v5, 0.0  ;;  %v94_v12 = vsel %vm30_vm0, %v50_v4, 0.0 }
   0x5   :  { %98 = vadd.xlane.f32.xlu0 %v97_v10  ;;  %92 = vadd.xlane.f32.xlu1 %v91_v11  ;;  %v88_v13 = vsel %vm30_vm0, %v48_v7, 0.0 }
   0x6   :  { %7 = vsyncpa [#allocation3], 0  ;;  %v480_v16 = vld [vmem:[%s622_s1 + $0x48] sm:$0xff]  ;;  %v485_v17 = vld [vmem:[%s622_s1 + $0x40] sm:$0xff]  ;;  %v85_v18 = vsel %vm30_vm0, %v47_v14, 0.0  ;;  %v82_v19 = vsel %vm30_vm0, %v46_v15, 0.0 }
   0x7   :  { %v45_v20 = vmul.f32 %v480_v16, %v480_v16  ;;  %v44_v21 = vmul.f32 %v485_v17, %v485_v17  ;;  %v496_v22 = vld [vmem:[%s622_s1 + $0x38] sm:$0xff]  ;;  %v501_v23 = vld [vmem:[%s622_s1 + $0x30] sm:$0xff]  ;;  %v512_v28 = vld [vmem:[%s622_s1 + $0x28] sm:$0xff]  ;;  %v413_v46 = vmov 0.0   ;;  %vm414_vm1 = vmmov 0  }
   0x8   :  { %v43_v26 = vmul.f32 %v496_v22, %v496_v22  ;;  %v42_v27 = vmul.f32 %v501_v23, %v501_v23  ;;  %v517_v29 = vld [vmem:[%s622_s1 + $0x20] sm:$0xff]  ;;  %v41_v32 = vmul.f32 %v512_v28, %v512_v28  ;;  %v528_v34 = vld [vmem:[%s622_s1 + $0x18] sm:$0xff]  ;;  %v533_v35 = vld [vmem:[%s622_s1 + $0x10] sm:$0xff]  ;;  %319 = vmatprep.subr.mxu0 %v413_v46  ;;  %351 = vmatprep.mubr.msk.f32.mxu0 %vm414_vm1, %v413_v46 }
   0x9   :  { %95 = vadd.xlane.f32.xlu0 %v94_v12  ;;  %89 = vadd.xlane.f32.xlu1 %v88_v13  ;;  %v79_v24 = vsel %vm30_vm0, %v45_v20, 0.0  ;;  %v76_v25 = vsel %vm30_vm0, %v44_v21, 0.0  ;;  %v40_v33 = vmul.f32 %v517_v29, %v517_v29  ;;  %v39_v38 = vmul.f32 %v528_v34, %v528_v34  ;;  %v544_v40 = vld [vmem:[%s622_s1 + $0x8] sm:$0xff]  ;;  %v549_v41 = vld [vmem:[%s622_s1] sm:$0xff] }
   0xa   :  { %v73_v30 = vsel %vm30_vm0, %v43_v26, 0.0  ;;  %v70_v31 = vsel %vm30_vm0, %v42_v27, 0.0  ;;  %v67_v36 = vsel %vm30_vm0, %v41_v32, 0.0  ;;  %v38_v39 = vmul.f32 %v533_v35, %v533_v35  ;;  %v561_v47 = vld [vmem:[%s621_s0] sm:$0xff]  ;;  %s415_s0 = smov [#allocation2]  }
   0xb   :  { %v64_v37 = vsel %vm30_vm0, %v40_v33, 0.0  ;;  %v61_v42 = vsel %vm30_vm0, %v39_v38, 0.0  ;;  %v37_v44 = vmul.f32 %v544_v40, %v544_v40  ;;  %v36_v45 = vmul.f32 %v549_v41, %v549_v41  ;;  %s277_s1 = sshll.u32 %s415_s0, 4  ;;  %s278_s1 = int_to_ptr.vmem [resolvable:$true] %s277_s1 }
   0xc   :  { %v58_v43 = vsel %vm30_vm0, %v38_v39, 0.0  ;;  %v29_v50 = vmul.f32 %v561_v47, %v561_v47  ;;  %s391_s15 = scalar_lea.vmem %s278_s1, 128  ;;  %p396_p1 = scmp.lt.s32.totalorder %s278_s1, %s278_s1 }
   0xd   :  { %86 = vadd.xlane.f32.xlu0 %v85_v18  ;;  %83 = vadd.xlane.f32.xlu1 %v82_v19  ;;  %v55_v48 = vsel %vm30_vm0, %v37_v44, 0.0  ;;  %v52_v49 = vsel %vm30_vm0, %v36_v45, 0.0  ;;  %p392_p0 = scmp.ne.s32.totalorder %s278_s1, %s391_s15  ;;  %p397_p2 = scmp.lt.s32.totalorder %s391_s15, %s391_s15 }
   0xe   :  { %v31_v51 = vsel %vm30_vm0, %v29_v50, 0.0 }
   0xf   :  { %p398_p3 = por %p397_p2, %p396_p1 }
  0x11   :  { %80 = vadd.xlane.f32.xlu0 %v79_v24  ;;  %77 = vadd.xlane.f32.xlu1 %v76_v25  ;;  %p399_p4 = pnand %p398_p3, %p392_p0 }
  0x15   :  { %74 = vadd.xlane.f32.xlu0 %v73_v30  ;;  %71 = vadd.xlane.f32.xlu1 %v70_v31 }
  0x19   :  { %68 = vadd.xlane.f32.xlu0 %v67_v36  ;;  %65 = vadd.xlane.f32.xlu1 %v64_v37 }
  0x1d   :  { %62 = vadd.xlane.f32.xlu0 %v61_v42  ;;  %59 = vadd.xlane.f32.xlu1 %v58_v43 }
  0x21   :  { %56 = vadd.xlane.f32.xlu0 %v55_v48  ;;  %53 = vadd.xlane.f32.xlu1 %v52_v49 }
  0x25   :  { %32 = vadd.xlane.f32.xlu0 %v31_v51 }
  0x8e   :  { %v99_v52 = vpop.xlane.xlu0 %98  ;;  %v93_v53 = vpop.xlane.xlu1 %92 }
  0x8f   :  { %v115_v54 = vmax.f32 %v99_v52, 1e-24  ;;  %v113_v55 = vmax.f32 %v93_v53, 1e-24 }
  0x91   :  { %357 = vrsqrt.f32 %v115_v54 }
  0x92   :  { %v96_v56 = vpop.xlane.xlu0 %95  ;;  %v90_v57 = vpop.xlane.xlu1 %89  ;;  %359 = vrsqrt.f32 %v113_v55 }
  0x93   :  { %v114_v58 = vmax.f32 %v96_v56, 1e-24  ;;  %v112_v59 = vmax.f32 %v90_v57, 1e-24 }
  0x95   :  { %361 = vrsqrt.f32 %v114_v58 }
  0x96   :  { %v87_v60 = vpop.xlane.xlu0 %86  ;;  %363 = vrsqrt.f32 %v112_v59  ;;  %v84_v62 = vpop.xlane.xlu1 %83 }
  0x97   :  { %v111_v61 = vmax.f32 %v87_v60, 1e-24  ;;  %v110_v63 = vmax.f32 %v84_v62, 1e-24 }
  0x99   :  { %365 = vrsqrt.f32 %v111_v61 }
  0x9a   :  { %v81_v4 = vpop.xlane.xlu0 %80  ;;  %367 = vrsqrt.f32 %v110_v63  ;;  %v78_v12 = vpop.xlane.xlu1 %77 }
  0x9b   :  { %v109_v10 = vmax.f32 %v81_v4, 1e-24  ;;  %v108_v15 = vmax.f32 %v78_v12, 1e-24 }
  0x9d   :  { %369 = vrsqrt.f32 %v109_v10 }
  0x9e   :  { %v358_v3 = vpop.eup %357  ;;  %371 = vrsqrt.f32 %v108_v15 }
  0x9f   :  { %v148_v5 = vmul.f32 %v358_v3, %v434_v0  ;;  %v360_v7 = vpop.eup %359  ;;  %v75_v0 = vpop.xlane.xlu0 %74 }
  0xa0   :  { %v146_v14 = vmul.f32 %v360_v7, %v444_v2  ;;  %v107_v20 = vmax.f32 %v75_v0, 1e-24 }
  0xa1   :  { %320 = vmatpush3.xpose.msk.msra.mxu0 %vm30_vm0, %v148_v5 }
  0xa2   :  { %v362_v11 = vpop.eup %361  ;;  %321 = vmatprep.subr.mxu0 %v413_v46  ;;  %373 = vrsqrt.f32 %v107_v20 }
  0xa3   :  { %v147_v13 = vmul.f32 %v362_v11, %v439_v1  ;;  %v364_v18 = vpop.eup %363  ;;  %v72_v1 = vpop.xlane.xlu1 %71 }
  0xa4   :  { %v145_v19 = vmul.f32 %v364_v18, %v455_v6  ;;  %v106_v24 = vmax.f32 %v72_v1, 1e-24  ;;  %v69_v26 = vpop.xlane.xlu0 %68 }
  0xa5   :  { %322 = vmatpush3.xpose.msk.msra.mxu0 %vm30_vm0, %v147_v13  ;;  %v105_v27 = vmax.f32 %v69_v26, 1e-24 }
  0xa6   :  { %323 = vmatprep.subr.mxu0 %v413_v46  ;;  %v366_v21 = vpop.eup %365  ;;  %375 = vrsqrt.f32 %v106_v24 }
  0xa7   :  { %v144_v2 = vmul.f32 %v366_v21, %v462_v8  ;;  %v368_v25 = vpop.eup %367  ;;  %v66_v31 = vpop.xlane.xlu1 %65  ;;  %377 = vrsqrt.f32 %v105_v27 }
  0xa8   :  { %v143_v6 = vmul.f32 %v368_v25, %v467_v9  ;;  %v104_v32 = vmax.f32 %v66_v31, 1e-24  ;;  %v63_v36 = vpop.xlane.xlu0 %62 }
  0xa9   :  { %324 = vmatpush3.xpose.msk.msra.mxu0 %vm30_vm0, %v146_v14  ;;  %v103_v37 = vmax.f32 %v63_v36, 1e-24 }
  0xaa   :  { %325 = vmatprep.subr.mxu0 %v413_v46  ;;  %v370_v30 = vpop.eup %369  ;;  %379 = vrsqrt.f32 %v104_v32 }
  0xab   :  { %v142_v8 = vmul.f32 %v370_v30, %v480_v16  ;;  %v372_v33 = vpop.eup %371  ;;  %v60_v39 = vpop.xlane.xlu1 %59  ;;  %381 = vrsqrt.f32 %v103_v37 }
  0xac   :  { %v141_v9 = vmul.f32 %v372_v33, %v485_v17  ;;  %v102_v42 = vmax.f32 %v60_v39, 1e-24  ;;  %v57_v44 = vpop.xlane.xlu0 %56 }
  0xad   :  { %326 = vmatpush3.xpose.msk.msra.mxu0 %vm30_vm0, %v145_v19  ;;  %v101_v45 = vmax.f32 %v57_v44, 1e-24 }
  0xae   :  { %327 = vmatprep.subr.mxu0 %v413_v46  ;;  %383 = vrsqrt.f32 %v102_v42 }
  0xaf   :  { %v374_v38 = vpop.eup %373  ;;  %v54_v49 = vpop.xlane.xlu1 %53  ;;  %385 = vrsqrt.f32 %v101_v45 }
  0xb0   :  { %v140_v16 = vmul.f32 %v374_v38, %v496_v22  ;;  %v100_v50 = vmax.f32 %v54_v49, 1e-24  ;;  %v33_v51 = vpop.xlane.xlu0 %32 }
  0xb1   :  { %328 = vmatpush3.xpose.msk.msra.mxu0 %vm30_vm0, %v144_v2  ;;  %v34_v53 = vmax.f32 %v33_v51, 1e-24 }
  0xb2   :  { %329 = vmatprep.subr.mxu0 %v413_v46  ;;  %387 = vrsqrt.f32 %v100_v50 }
  0xb3   :  { %v376_v43 = vpop.eup %375  ;;  %389 = vrsqrt.f32 %v34_v53 }
  0xb4   :  { %v139_v17 = vmul.f32 %v376_v43, %v501_v23  ;;  %v378_v48 = vpop.eup %377 }
  0xb5   :  { %330 = vmatpush3.xpose.msk.msra.mxu0 %vm30_vm0, %v143_v6  ;;  %v138_v22 = vmul.f32 %v378_v48, %v512_v28 }
  0xb6   :  { %331 = vmatprep.subr.mxu0 %v413_v46 }
  0xb7   :  { %v380_v52 = vpop.eup %379 }
  0xb8   :  { %v137_v23 = vmul.f32 %v380_v52, %v517_v29  ;;  %v382_v54 = vpop.eup %381 }
  0xb9   :  { %332 = vmatpush3.xpose.msk.msra.mxu0 %vm30_vm0, %v142_v8  ;;  %v136_v55 = vmul.f32 %v382_v54, %v528_v34 }
  0xba   :  { %333 = vmatprep.subr.mxu0 %v413_v46 }
  0xbb   :  { %v384_v28 = vpop.eup %383 }
  0xbc   :  { %v135_v56 = vmul.f32 %v384_v28, %v533_v35  ;;  %v386_v57 = vpop.eup %385 }
  0xbd   :  { %334 = vmatpush3.xpose.msk.msra.mxu0 %vm30_vm0, %v141_v9  ;;  %v134_v29 = vmul.f32 %v386_v57, %v544_v40 }
  0xbe   :  { %335 = vmatprep.subr.mxu0 %v413_v46 }
  0xbf   :  { %v388_v58 = vpop.eup %387 }
  0xc0   :  { %v390_v59 = vpop.eup %389  ;;  %v133_v34 = vmul.f32 %v388_v58, %v549_v41 }
  0xc1   :  { %336 = vmatpush3.xpose.msk.msra.mxu0 %vm30_vm0, %v140_v16  ;;  %v132_v60 = vmul.f32 %v390_v59, %v561_v47 }
  0xc2   :  { %337 = vmatprep.subr.mxu0 %v413_v46 }
  0xc5   :  { %338 = vmatpush3.xpose.msk.msra.mxu0 %vm30_vm0, %v139_v17 }
  0xc6   :  { %339 = vmatprep.subr.mxu0 %v413_v46 }
  0xc9   :  { %340 = vmatpush3.xpose.msk.msra.mxu0 %vm30_vm0, %v138_v22 }
  0xca   :  { %341 = vmatprep.subr.mxu0 %v413_v46 }
  0xcd   :  { %342 = vmatpush3.xpose.msk.msra.mxu0 %vm30_vm0, %v137_v23 }
  0xce   :  { %343 = vmatprep.subr.mxu0 %v413_v46 }
  0xd1   :  { %344 = vmatpush3.xpose.msk.msra.mxu0 %vm30_vm0, %v136_v55 }
  0xd2   :  { %345 = vmatprep.subr.mxu0 %v413_v46 }
  0xd5   :  { %346 = vmatpush3.xpose.msk.msra.mxu0 %vm30_vm0, %v135_v56 }
  0xd6   :  { %347 = vmatprep.subr.mxu0 %v413_v46 }
  0xd9   :  { %348 = vmatpush3.xpose.msk.msra.mxu0 %vm30_vm0, %v134_v29 }
  0xda   :  { %349 = vmatprep.subr.mxu0 %v413_v46 }
  0xdd   :  { %350 = vmatpush3.xpose.msk.msra.mxu0 %vm30_vm0, %v133_v34 }
  0xe0   :  { %352 = vmatmul.mubr.msk.f32.vlgmr.msra.gmra.mxu0 %vm30_vm0, %v132_v60 }
 0x1a0   :  { %v266_v35 = vpop.f32.mrf.mxu0 }
 0x1a1   :  { %270 = vst [vmem:[#allocation2] sm:$0xff] %v266_v35 }
 0x1a2   :  { %v353_v40 = vpop.f32.mrf.mxu0 }
 0x1a3   :  { %402 = shalt.err (!%p399_p4)
}
 0x1a4   :  { %280 = dma.vmem_to_hbm [thread:$0]  %s278_s1, 128, %s623_s2, [#allocation3]  }
 0x1a5   :  { %411 = dma.done.wait [#allocation3], 128  }
 0x1a6   :  { %412 = vsyncadd [#allocation3], 4294967168 }
 0x1a7   :  { %284 = vsyncpa [#allocation3], 1 }

</bundles_post_ra>
